<compile_context>
chip_gen: v7x
topology: tpu7x:2x2x1
jax: 0.10.0
libtpu: 0.0.40
codegen_flags: <defaults>
</compile_context>

<pallas_src>
import numpy as np

import jax
import jax.numpy as jnp
from jax.experimental import pallas as pl
from jax.experimental.pallas import tpu as pltpu

_BT_MAX = 16  # masks processed per grid step (whole batch in one step if B <= this)


# ----------------------------- Pallas kernels ------------------------------ #
def _gcn2_row_kernel(a_ref, a_col_ref, x_ref, w1_ref, b1_ref, w2_ref, b2_ref, o_ref):
    """Fused 2-layer GCN, output_idx row only, for one batch tile of masks.

    a_ref     : (N, N)     normalized adjacency (MXU dtype), VMEM-resident
    a_col_ref : (N, 1)     A_hat[output_idx, :] as a column, f32 (VPU path)
    x_ref     : (bt, N, F) batch tile of node-feature masks, f32 (cast in-kernel)
    w1/b1/w2/b2            weights (MXU dtype) / biases (f32), VMEM-resident
    o_ref     : (bt, C)    output slab for this batch tile, f32
    """
    bt, n, _ = x_ref.shape
    h_dim = w1_ref.shape[1]
    a = a_ref[...]                                    # (N, N)
    mxu = a.dtype

    # Layer-1 aggregation: A_hat @ X_b per mask (2-D dots), concatenated along
    # the contiguous leading row axis so the shared-weight matmuls below run
    # once with M = bt*N.
    ax = jnp.concatenate(
        [jnp.dot(a, x_ref[b].astype(mxu), preferred_element_type=jnp.float32)
         for b in range(bt)], axis=0)                 # (bt*N, F) f32

    # Layer-1 transform: one batched matmul + f32 bias/relu on the VPU.
    hh = jnp.dot(ax.astype(w1_ref.dtype), w1_ref[...],
                 preferred_element_type=jnp.float32)  # (bt*N, H) f32
    hh = jnp.maximum(hh + b1_ref[...], 0.0)

    # Layer 2 (output_idx row only), reordered:
    #   row_b = A_hat[idx] @ H_b   -> broadcast-multiply + sublane reduce
    #   out_b = row_b @ W2 + b2    -> one (bt, H) @ (H, C) matmul for the tile
    h3 = hh.reshape(bt, n, h_dim)                     # leading-dim split only
    w = a_col_ref[...][None, :, :]                    # (1, N, 1) f32
    rows = jnp.sum(w * h3, axis=1)                    # (bt, H) f32
    out = jnp.dot(rows.astype(w2_ref.dtype), w2_ref[...],
                  preferred_element_type=jnp.float32) + b2_ref[...]
    o_ref[...] = out.astype(o_ref.dtype)              # (bt, C)


def _gcn2_full_kernel(a_ref, x_ref, w1_ref, b1_ref, w2_ref, b2_ref, o_ref):
    """Fused 2-layer GCN, full logits (output_idx is None), one batch tile.

    o_ref : (bt, N, C)
    """
    bt, n, _ = x_ref.shape
    a = a_ref[...]
    mxu = a.dtype

    ax = jnp.concatenate(
        [jnp.dot(a, x_ref[b].astype(mxu), preferred_element_type=jnp.float32)
         for b in range(bt)], axis=0)                 # (bt*N, F)
    hh = jnp.dot(ax.astype(w1_ref.dtype), w1_ref[...],
                 preferred_element_type=jnp.float32)  # (bt*N, H)
    hh = jnp.maximum(hh + b1_ref[...], 0.0)

    # H @ W2 batched over the tile (bias added AFTER the A_hat aggregation).
    hw = jnp.dot(hh.astype(w2_ref.dtype), w2_ref[...],
                 preferred_element_type=jnp.float32)  # (bt*N, C)
    b2 = b2_ref[...]
    for b in range(bt):
        blk = hw[b * n:(b + 1) * n].astype(mxu)       # (N, C)
        o_ref[b] = (jnp.dot(a, blk, preferred_element_type=jnp.float32)
                    + b2).astype(o_ref.dtype)


# ------------------------------ call wrappers ------------------------------- #
def _pick_bt(batch):
    """Batch-tile size and padded batch (whole batch in one step when small)."""
    if batch <= _BT_MAX:
        return batch, batch
    padded = ((batch + _BT_MAX - 1) // _BT_MAX) * _BT_MAX
    return _BT_MAX, padded


def _vmem_limit_bytes():
    # Gate on the actual chip (v7x has 64 MiB/TC vs 128 MiB on v5e/v6e).
    try:
        cap = int(pltpu.get_tpu_info().vmem_capacity_bytes)
    except Exception:
        cap = 64 * 1024 * 1024
    return int(min(max(cap // 2, 16 * 1024 * 1024), 100 * 1024 * 1024))


def _resident(shape):
    # Same block every grid step -> stays VMEM-resident across the batch.
    # TODO(synk): pipeline_mode=pl.Buffered(1) once single-buffering residents
    # is needed for large-N VMEM headroom (esp. v7x).
    return pl.BlockSpec(shape, lambda i: (0,) * len(shape))


def _nbytes(t):
    return int(t.size) * t.dtype.itemsize


@jax.jit
def gcn2_forward_row(a_full, a_col, x, w1, b1, w2, b2):
    """out[b] = A_hat[idx] @ relu(A_hat @ x[b] @ W1 + b1) @ W2 + b2  ->  (B, C)."""
    B, N, F = x.shape
    H = w1.shape[1]
    C = w2.shape[1]
    bt, pb = _pick_bt(B)
    if pb != B:
        x = jnp.pad(x, ((0, pb - B), (0, 0), (0, 0)))
    steps = pb // bt

    grid_spec = pltpu.PrefetchScalarGridSpec(
        num_scalar_prefetch=0,
        grid=(steps,),
        in_specs=[
            _resident((N, N)),                               # A_hat (MXU dtype)
            _resident((N, 1)),                               # A_hat[idx] column (f32)
            pl.BlockSpec((bt, N, F), lambda i: (i, 0, 0)),   # masks (f32, cast in-kernel)
            _resident((F, H)), _resident((1, H)),
            _resident((H, C)), _resident((1, C)),
        ],
        out_specs=pl.BlockSpec((bt, C), lambda i: (i, 0)),
    )
    cost = pl.CostEstimate(
        flops=2 * pb * (N * N * F + N * F * H + N * H + H * C),
        transcendentals=0,
        bytes_accessed=(_nbytes(a_full) + _nbytes(a_col) + pb * N * F * 4
                        + _nbytes(w1) + _nbytes(b1) + _nbytes(w2) + _nbytes(b2)
                        + pb * C * 4),
    )
    out = pl.pallas_call(
        _gcn2_row_kernel,
        out_shape=jax.ShapeDtypeStruct((pb, C), jnp.float32),
        grid_spec=grid_spec,
        compiler_params=pltpu.CompilerParams(
            # "arbitrary": avoids duplicating the resident A_hat DMA/VMEM copy
            # into both v7x TensorCores; no-op on single-TC v5e/v6e.
            dimension_semantics=("arbitrary",),
            vmem_limit_bytes=_vmem_limit_bytes(),
        ),
        cost_estimate=cost,
    )(a_full, a_col, x, w1, b1, w2, b2)
    return out[:B]


@jax.jit
def gcn2_forward_full(a_full, x, w1, b1, w2, b2):
    """Full logits: out[b] = A_hat @ relu(A_hat @ x[b] @ W1 + b1) @ W2 + b2 -> (B, N, C)."""
    B, N, F = x.shape
    H = w1.shape[1]
    C = w2.shape[1]
    bt, pb = _pick_bt(B)
    if pb != B:
        x = jnp.pad(x, ((0, pb - B), (0, 0), (0, 0)))
    steps = pb // bt

    grid_spec = pltpu.PrefetchScalarGridSpec(
        num_scalar_prefetch=0,
        grid=(steps,),
        in_specs=[
            _resident((N, N)),
            pl.BlockSpec((bt, N, F), lambda i: (i, 0, 0)),
            _resident((F, H)), _resident((1, H)),
            _resident((H, C)), _resident((1, C)),
        ],
        out_specs=pl.BlockSpec((bt, N, C), lambda i: (i, 0, 0)),
    )
    cost = pl.CostEstimate(
        flops=2 * pb * (N * N * F + N * F * H + N * H * C + N * N * C),
        transcendentals=0,
        bytes_accessed=(_nbytes(a_full) + pb * N * F * 4
                        + _nbytes(w1) + _nbytes(b1) + _nbytes(w2) + _nbytes(b2)
                        + pb * N * C * 4),
    )
    out = pl.pallas_call(
        _gcn2_full_kernel,
        out_shape=jax.ShapeDtypeStruct((pb, N, C), jnp.float32),
        grid_spec=grid_spec,
        compiler_params=pltpu.CompilerParams(
            dimension_semantics=("arbitrary",),
            vmem_limit_bytes=_vmem_limit_bytes(),
        ),
        cost_estimate=cost,
    )(a_full, x, w1, b1, w2, b2)
    return out[:B]


# --------------------------- plain-JAX glue --------------------------------- #
def build_norm_adj(edge_index, num_nodes):
    """GCN symmetric normalized adjacency with self loops (dense, small N).

    PyG GCNConv aggregates messages src -> dst, i.e. A[dst, src] = 1 (matches
    directed edge_index; identical for undirected graphs).  max(A, I) so
    pre-existing self-loops are not double-counted.
    TODO(synk): weighted edges (edge_weight) are not handled.
    """
    ei = jnp.asarray(edge_index)
    a = jnp.zeros((num_nodes, num_nodes), jnp.float32)
    a = a.at[ei[1], ei[0]].set(1.0)
    a = jnp.maximum(a, jnp.eye(num_nodes, dtype=jnp.float32))
    deg = a.sum(axis=1)
    d_inv_sqrt = jnp.where(deg > 0, jax.lax.rsqrt(deg), 0.0)
    return d_inv_sqrt[:, None] * a * d_inv_sqrt[None, :]


def _edge_key(edge_index):
    """Content-based cache key (id() is unsafe: ids are reused after GC)."""
    arr = np.asarray(jax.device_get(edge_index))
    return (arr.shape, str(arr.dtype), arr.tobytes())


class CaptumModelPallas:
    """JAX/Pallas analogue of torch_geometric CaptumModel with mask_type='node'."""

    def __init__(self, params, num_nodes, mask_type="node", output_idx=None,
                 mxu_dtype=jnp.bfloat16):
        # TODO(synk): 'edge' / 'node_and_edge' mask types need set_masks /
        # clear_masks hooks on message passing; only 'node' is implemented.
        assert mask_type == "node"
        # TODO(synk): Tensor-valued output_idx (multi-node selection) not handled.
        assert output_idx is None or isinstance(output_idx, int)
        self.num_nodes = num_nodes
        self.output_idx = output_idx
        # mxu_dtype=jnp.float32 gives a full-precision path for
        # attribution-quality validation (bf16 default for MXU throughput).
        self.mxu_dtype = mxu_dtype

        w1, b1, w2, b2 = params
        self.w1 = jnp.asarray(w1).astype(mxu_dtype)
        self.w2 = jnp.asarray(w2).astype(mxu_dtype)
        self.b1 = jnp.asarray(b1, jnp.float32)
        self.b2 = jnp.asarray(b2, jnp.float32)

        # A_hat cache keyed on edge_index content: Captum feeds the same
        # edge_index hundreds of times with different masks.
        self._adj_cache = {}

    def _get_adj(self, edge_index):
        key = _edge_key(edge_index)
        if key not in self._adj_cache:
            a_hat = build_norm_adj(edge_index, self.num_nodes)          # f32 (N, N)
            a_full = a_hat.astype(self.mxu_dtype)
            a_col = None
            if self.output_idx is not None:
                # Only this row of A_hat feeds the layer-2 aggregation; kept
                # f32 and column-shaped for the in-kernel VPU reduce path.
                a_col = a_hat[self.output_idx].reshape(self.num_nodes, 1)
            self._adj_cache[key] = (
                jax.block_until_ready(a_full),
                None if a_col is None else jax.block_until_ready(a_col),
            )
        return self._adj_cache[key]

    def __call__(self, mask, *args):
        assert len(args) >= 1, "Expects at least edge_index as args."
        edge_index = args[0]

        # Mask stays f32 here; the cast to the MXU dtype happens inside the
        # kernel (under the DMA), avoiding a separate un-fused HBM cast pass.
        x = jnp.asarray(mask, jnp.float32)
        if x.ndim == 2:
            x = x[None]
        # Original CaptumModel asserts mask.shape[0] == 1.  We additionally
        # accept a batch of perturbed masks (Captum internal_batch_size) and
        # run the whole batch through a single pallas_call; B == 1 reproduces
        # the original behavior exactly.

        a_full, a_col = self._get_adj(edge_index)
        if self.output_idx is not None:
            out = gcn2_forward_row(a_full, a_col, x,
                                   self.w1, self.b1, self.w2, self.b2)
            # (B, C); for B == 1 this equals torch's x[output_idx].unsqueeze(0).
            return out
        out = gcn2_forward_full(a_full, x, self.w1, self.b1, self.w2, self.b2)
        # output_idx is None: full logits.  Match the unbatched torch output
        # (N, C) when B == 1; (B, N, C) otherwise (documented divergence).
        return out[0] if out.shape[0] == 1 else out


# ------------------------------- main --------------------------------------- #
if __name__ == "__main__":
    key = jax.random.PRNGKey(0)
    N, F_IN, HID, C_OUT, B = 16, 32, 64, 8, 4

    k_mask, k_w1, k_b1, k_w2, k_b2 = jax.random.split(key, 5)

    # Deterministic "checkpoint": parameters of the wrapped 2-layer GCN.
    w1 = jax.random.normal(k_w1, (F_IN, HID), jnp.float32) * 0.1
    b1 = jax.random.normal(k_b1, (1, HID), jnp.float32) * 0.01
    w2 = jax.random.normal(k_w2, (HID, C_OUT), jnp.float32) * 0.1
    b2 = jax.random.normal(k_b2, (1, C_OUT), jnp.float32) * 0.01

    # Batch of perturbed node-feature masks (Captum internal_batch_size path).
    masks = jax.random.normal(k_mask, (B, N, F_IN), jnp.float32)

    # Deterministic bidirectional ring graph, edge_index [2, 2N].
    src = jnp.arange(N, dtype=jnp.int32)
    dst = (src + 1) % N
    edge_index = jnp.concatenate(
        [jnp.stack([src, dst], axis=0), jnp.stack([dst, src], axis=0)], axis=1
    )

    model = CaptumModelPallas(
        params=(w1, b1, w2, b2), num_nodes=N, mask_type="node", output_idx=3
    )

    # Batched call: one pallas_call, one grid step, for all B perturbed masks.
    out_b = jax.block_until_ready(model(masks, edge_index))
    assert out_b.shape == (B, C_OUT), out_b.shape

    # Original CaptumModel calling convention (mask.shape[0] == 1).
    out_1 = jax.block_until_ready(model(masks[:1], edge_index))
    assert out_1.shape == (1, C_OUT), out_1.shape

    # Full-logits path (output_idx=None).
    model_full = CaptumModelPallas(
        params=(w1, b1, w2, b2), num_nodes=N, mask_type="node", output_idx=None
    )
    out_full = jax.block_until_ready(model_full(masks[:1], edge_index))
    assert out_full.shape == (N, C_OUT), out_full.shape

    # Plain-JAX f32 reference (loose tolerance: MXU operands are bf16).
    a_hat_ref = build_norm_adj(edge_index, N)
    h_ref = jax.nn.relu(jnp.einsum("nm,bmf->bnf", a_hat_ref, masks) @ w1 + b1)
    o_ref = jnp.einsum("nm,bmh->bnh", a_hat_ref, h_ref) @ w2 + b2          # (B, N, C)
    err_row = float(jnp.max(jnp.abs(out_b - o_ref[:, 3, :])))
    err_full = float(jnp.max(jnp.abs(out_full - o_ref[0])))
    assert err_row < 1e-1 and err_full < 1e-1, (err_row, err_full)

    print("KERNEL_OK")
</pallas_src>

<mosaic_0001>
module attributes {stable_mosaic.version = 11 : i64} {
  func.func @_gcn2_row_kernel(%arg0: i32, %arg1: memref<16x16xbf16, #tpu.memory_space<vmem>>, %arg2: memref<16x1xf32, #tpu.memory_space<vmem>>, %arg3: memref<4x16x32xf32, #tpu.memory_space<vmem>>, %arg4: memref<32x64xbf16, #tpu.memory_space<vmem>>, %arg5: memref<1x64xf32, #tpu.memory_space<vmem>>, %arg6: memref<64x8xbf16, #tpu.memory_space<vmem>>, %arg7: memref<1x8xf32, #tpu.memory_space<vmem>>, %arg8: memref<4x8xf32, #tpu.memory_space<vmem>>) attributes {dimension_semantics = [#tpu.dimension_semantics<arbitrary>], iteration_bounds = array<i64: 1>, scalar_prefetch = 0 : i64, scratch_operands = 0 : i64, tpu.core_type = #tpu.core_type<tc>, window_params = [{pipeline_mode = #tpu.pipeline_mode<synchronous>, transform_indices = @transform_0, window_bounds = array<i64: 16, 16>}, {pipeline_mode = #tpu.pipeline_mode<synchronous>, transform_indices = @transform_1, window_bounds = array<i64: 16, 1>}, {transform_indices = @transform_2, window_bounds = array<i64: 4, 16, 32>}, {pipeline_mode = #tpu.pipeline_mode<synchronous>, transform_indices = @transform_3, window_bounds = array<i64: 32, 64>}, {pipeline_mode = #tpu.pipeline_mode<synchronous>, transform_indices = @transform_4, window_bounds = array<i64: 1, 64>}, {pipeline_mode = #tpu.pipeline_mode<synchronous>, transform_indices = @transform_5, window_bounds = array<i64: 64, 8>}, {pipeline_mode = #tpu.pipeline_mode<synchronous>, transform_indices = @transform_6, window_bounds = array<i64: 1, 8>}, {transform_indices = @transform_7, window_bounds = array<i64: 4, 8>}]} {
    %c0 = arith.constant 0 : index
    %c0_0 = arith.constant 0 : index
    %0 = vector.load %arg1[%c0, %c0_0] : memref<16x16xbf16, #tpu.memory_space<vmem>>, vector<16x16xbf16>
    %c0_1 = arith.constant 0 : index
    %c0_2 = arith.constant 0 : index
    %c0_3 = arith.constant 0 : index
    %1 = vector.load %arg3[%c0_1, %c0_2, %c0_3] : memref<4x16x32xf32, #tpu.memory_space<vmem>>, vector<1x16x32xf32>
    %2 = vector.shape_cast %1 : vector<1x16x32xf32> to vector<16x32xf32>
    %3 = arith.truncf %2 : vector<16x32xf32> to vector<16x32xbf16>
    %cst = arith.constant dense<0.000000e+00> : vector<16x32xf32>
    %4 = tpu.matmul %0, %3, %cst {dimension_numbers = #tpu.dot_dimension_numbers<[1], [0], [0], [1], [0, 0, 1, 1], [], []>} : vector<16x16xbf16>, vector<16x32xbf16>, vector<16x32xf32> -> vector<16x32xf32>
    %c1 = arith.constant 1 : index
    %c0_4 = arith.constant 0 : index
    %c0_5 = arith.constant 0 : index
    %5 = vector.load %arg3[%c1, %c0_4, %c0_5] : memref<4x16x32xf32, #tpu.memory_space<vmem>>, vector<1x16x32xf32>
    %6 = vector.shape_cast %5 : vector<1x16x32xf32> to vector<16x32xf32>
    %7 = arith.truncf %6 : vector<16x32xf32> to vector<16x32xbf16>
    %cst_6 = arith.constant dense<0.000000e+00> : vector<16x32xf32>
    %8 = tpu.matmul %0, %7, %cst_6 {dimension_numbers = #tpu.dot_dimension_numbers<[1], [0], [0], [1], [0, 0, 1, 1], [], []>} : vector<16x16xbf16>, vector<16x32xbf16>, vector<16x32xf32> -> vector<16x32xf32>
    %c2 = arith.constant 2 : index
    %c0_7 = arith.constant 0 : index
    %c0_8 = arith.constant 0 : index
    %9 = vector.load %arg3[%c2, %c0_7, %c0_8] : memref<4x16x32xf32, #tpu.memory_space<vmem>>, vector<1x16x32xf32>
    %10 = vector.shape_cast %9 : vector<1x16x32xf32> to vector<16x32xf32>
    %11 = arith.truncf %10 : vector<16x32xf32> to vector<16x32xbf16>
    %cst_9 = arith.constant dense<0.000000e+00> : vector<16x32xf32>
    %12 = tpu.matmul %0, %11, %cst_9 {dimension_numbers = #tpu.dot_dimension_numbers<[1], [0], [0], [1], [0, 0, 1, 1], [], []>} : vector<16x16xbf16>, vector<16x32xbf16>, vector<16x32xf32> -> vector<16x32xf32>
    %c3 = arith.constant 3 : index
    %c0_10 = arith.constant 0 : index
    %c0_11 = arith.constant 0 : index
    %13 = vector.load %arg3[%c3, %c0_10, %c0_11] : memref<4x16x32xf32, #tpu.memory_space<vmem>>, vector<1x16x32xf32>
    %14 = vector.shape_cast %13 : vector<1x16x32xf32> to vector<16x32xf32>
    %15 = arith.truncf %14 : vector<16x32xf32> to vector<16x32xbf16>
    %cst_12 = arith.constant dense<0.000000e+00> : vector<16x32xf32>
    %16 = tpu.matmul %0, %15, %cst_12 {dimension_numbers = #tpu.dot_dimension_numbers<[1], [0], [0], [1], [0, 0, 1, 1], [], []>} : vector<16x16xbf16>, vector<16x32xbf16>, vector<16x32xf32> -> vector<16x32xf32>
    %17 = tpu.concatenate %4, %8, %12, %16 in 0 : vector<16x32xf32>, vector<16x32xf32>, vector<16x32xf32>, vector<16x32xf32> -> vector<64x32xf32>
    %18 = arith.truncf %17 : vector<64x32xf32> to vector<64x32xbf16>
    %c0_13 = arith.constant 0 : index
    %c0_14 = arith.constant 0 : index
    %19 = vector.load %arg4[%c0_13, %c0_14] : memref<32x64xbf16, #tpu.memory_space<vmem>>, vector<32x64xbf16>
    %cst_15 = arith.constant dense<0.000000e+00> : vector<64x64xf32>
    %20 = tpu.matmul %18, %19, %cst_15 {dimension_numbers = #tpu.dot_dimension_numbers<[1], [0], [0], [1], [0, 0, 1, 1], [], []>} : vector<64x32xbf16>, vector<32x64xbf16>, vector<64x64xf32> -> vector<64x64xf32>
    %c0_16 = arith.constant 0 : index
    %c0_17 = arith.constant 0 : index
    %21 = vector.load %arg5[%c0_16, %c0_17] : memref<1x64xf32, #tpu.memory_space<vmem>>, vector<1x64xf32>
    %22 = vector.broadcast %21 : vector<1x64xf32> to vector<64x64xf32>
    %23 = arith.addf %20, %22 : vector<64x64xf32>
    %cst_18 = arith.constant 0.000000e+00 : f32
    %24 = vector.broadcast %cst_18 : f32 to vector<64x64xf32>
    %25 = arith.maximumf %23, %24 : vector<64x64xf32>
    %26 = vector.shape_cast %25 : vector<64x64xf32> to vector<4x16x64xf32>
    %c0_19 = arith.constant 0 : index
    %c0_20 = arith.constant 0 : index
    %27 = vector.load %arg2[%c0_19, %c0_20] : memref<16x1xf32, #tpu.memory_space<vmem>>, vector<16x1xf32>
    %28 = vector.shape_cast %27 : vector<16x1xf32> to vector<1x16x1xf32>
    %29 = vector.broadcast %28 : vector<1x16x1xf32> to vector<4x16x64xf32>
    %30 = arith.mulf %29, %26 : vector<4x16x64xf32>
    %cst_21 = arith.constant dense<0.000000e+00> : vector<4x64xf32>
    %31 = vector.multi_reduction <add>, %30, %cst_21 [1] : vector<4x16x64xf32> to vector<4x64xf32>
    %32 = arith.truncf %31 : vector<4x64xf32> to vector<4x64xbf16>
    %c0_22 = arith.constant 0 : index
    %c0_23 = arith.constant 0 : index
    %33 = vector.load %arg6[%c0_22, %c0_23] : memref<64x8xbf16, #tpu.memory_space<vmem>>, vector<64x8xbf16>
    %cst_24 = arith.constant dense<0.000000e+00> : vector<4x8xf32>
    %34 = tpu.matmul %32, %33, %cst_24 {dimension_numbers = #tpu.dot_dimension_numbers<[1], [0], [0], [1], [0, 0, 1, 1], [], []>} : vector<4x64xbf16>, vector<64x8xbf16>, vector<4x8xf32> -> vector<4x8xf32>
    %c0_25 = arith.constant 0 : index
    %c0_26 = arith.constant 0 : index
    %35 = vector.load %arg7[%c0_25, %c0_26] : memref<1x8xf32, #tpu.memory_space<vmem>>, vector<1x8xf32>
    %36 = vector.broadcast %35 : vector<1x8xf32> to vector<4x8xf32>
    %37 = arith.addf %34, %36 : vector<4x8xf32>
    %c0_27 = arith.constant 0 : index
    %c0_28 = arith.constant 0 : index
    %38 = vector.load %arg8[%c0_27, %c0_28] : memref<4x8xf32, #tpu.memory_space<vmem>>, vector<4x8xf32>
    tpu.vector_store %arg8[%c0_27, %c0_28], %37 {strides = array<i32>} : memref<4x8xf32, #tpu.memory_space<vmem>>, vector<4x8xf32>,
    return
  }
  func.func @transform_0(%arg0: i32) -> (i32, i32) {
    %c0_i32 = arith.constant 0 : i32
    %c0_i32_0 = arith.constant 0 : i32
    %c0_i32_1 = arith.constant 0 : i32
    return %c0_i32, %c0_i32_0 : i32, i32
  }
  func.func @transform_1(%arg0: i32) -> (i32, i32) {
    %c0_i32 = arith.constant 0 : i32
    %c0_i32_0 = arith.constant 0 : i32
    %c0_i32_1 = arith.constant 0 : i32
    return %c0_i32, %c0_i32_0 : i32, i32
  }
  func.func @transform_2(%arg0: i32) -> (i32, i32, i32) {
    %c0_i32 = arith.constant 0 : i32
    %c0_i32_0 = arith.constant 0 : i32
    %c0_i32_1 = arith.constant 0 : i32
    return %arg0, %c0_i32, %c0_i32_0 : i32, i32, i32
  }
  func.func @transform_3(%arg0: i32) -> (i32, i32) {
    %c0_i32 = arith.constant 0 : i32
    %c0_i32_0 = arith.constant 0 : i32
    %c0_i32_1 = arith.constant 0 : i32
    return %c0_i32, %c0_i32_0 : i32, i32
  }
  func.func @transform_4(%arg0: i32) -> (i32, i32) {
    %c0_i32 = arith.constant 0 : i32
    %c0_i32_0 = arith.constant 0 : i32
    %c0_i32_1 = arith.constant 0 : i32
    return %c0_i32, %c0_i32_0 : i32, i32
  }
  func.func @transform_5(%arg0: i32) -> (i32, i32) {
    %c0_i32 = arith.constant 0 : i32
    %c0_i32_0 = arith.constant 0 : i32
    %c0_i32_1 = arith.constant 0 : i32
    return %c0_i32, %c0_i32_0 : i32, i32
  }
  func.func @transform_6(%arg0: i32) -> (i32, i32) {
    %c0_i32 = arith.constant 0 : i32
    %c0_i32_0 = arith.constant 0 : i32
    %c0_i32_1 = arith.constant 0 : i32
    return %c0_i32, %c0_i32_0 : i32, i32
  }
  func.func @transform_7(%arg0: i32) -> (i32, i32) {
    %c0_i32 = arith.constant 0 : i32
    %c0_i32_0 = arith.constant 0 : i32
    return %arg0, %c0_i32 : i32, i32
  }
}

</mosaic_0001>

<bundles_post_ra>
// kernel: gcn2_forward_row.1
= control target key start
LH: loop header
LB: loop body
LE: loop exit
PB: predicated region body
PF: predicated region fallthrough
CT: control target
= control target key end

     0   :  { %12 = vsyncpa [#allocation3], 0  ;;  %s807_s0 = inlined_call_operand.vmem [shape: bf16[16,16], index: 0, kind: input, shape index: {}]   ;;  %s808_s1 = inlined_call_operand.vmem [shape: f32[16,1], index: 1, kind: input, shape index: {}]   ;;  %s809_s2 = inlined_call_operand.hbm [shape: f32[4,16,32], index: 2, kind: input, shape index: {}]   ;;  %s810_s3 = inlined_call_operand.vmem [shape: bf16[32,64], index: 3, kind: input, shape index: {}]   ;;  %s811_s4 = inlined_call_operand.vmem [shape: f32[1,64], index: 4, kind: input, shape index: {}]   ;;  %s812_s5 = inlined_call_operand.vmem [shape: bf16[64,8], index: 5, kind: input, shape index: {}]   ;;  %s813_s6 = inlined_call_operand.vmem [shape: f32[1,8], index: 6, kind: input, shape index: {}]   ;;  %s814_s7 = inlined_call_operand.hbm [shape: f32[4,8], index: 7, kind: output, shape index: {}]  }
   0x1   :  { %13 = vsyncpa [#allocation4], 0  ;;  %s668_s24 = smov [#allocation2]   ;;  %s620_s28 = scalar_lea.hbm %s809_s2, 1024 }
   0x2   :  { %s23_s25 = sshll.u32 %s668_s24, 4  ;;  %p621_p0 = scmp.ne.s32.totalorder %s809_s2, %s620_s28  ;;  %s24_s25 = int_to_ptr.vmem [resolvable:$true] %s23_s25 }
   0x3   :  { %p624_p1 = scmp.lt.u32.totalorder %s620_s28, %s809_s2 }
   0x5   :  { %p626_p2 = pnand %p624_p1, %p621_p0 }
   0x7   :  { %629 = shalt.err (!%p626_p2)
}
   0x8   :  { %s630_s10 = scalar_lea.vmem %s24_s25, 1024  ;;  %p635_p4 = scmp.lt.s32.totalorder %s24_s25, %s24_s25 }
   0x9   :  { %p631_p3 = scmp.ne.s32.totalorder %s24_s25, %s630_s10  ;;  %p636_p5 = scmp.lt.s32.totalorder %s630_s10, %s630_s10 }
   0xb   :  { %p637_p6 = por %p636_p5, %p635_p4 }
   0xd   :  { %p638_p7 = pnand %p637_p6, %p631_p3 }
   0xf   :  { %641 = shalt.err (!%p638_p7)
}
  0x10   :  { %s669_s11 = smov 128   ;;  %s670_s12 = smov 8  }
  0x11   :  { %29 = dma.hbm_to_vmem [thread:$0]  %s809_s2, 1024, %s24_s25, [#allocation3], %s669_s11, %s669_s11, %s670_s12  }
  0x12   :  { %664 = dma.done.wait [#allocation3], 1024  }
  0x13   :  { %665 = vsyncadd [#allocation3], 4294966272  ;;  %v671_v0 = vmov 0.0   ;;  %vm672_vm0 = vmmov 0   ;;  %v44_v1 = vld [vmem:[#allocation2] sm:$0xff]  ;;  %v45_v2 = vld [vmem:[#allocation2 + $0x8] sm:$0xff] }
  0x14   :  { %557 = vmatprep.subr.bf16.mxu0 %v671_v0  ;;  %563 = vmatprep.subr.bf16.mxu1 %v671_v0  ;;  %v98_v3 = vld [vmem:[#allocation2 + $0x10] sm:$0xff]  ;;  %v46_v4 = vpack.c.bf16 %v45_v2, %v44_v1  ;;  %v99_v5 = vld [vmem:[#allocation2 + $0x18] sm:$0xff]  ;;  %v613_v7 = vld [vmem:[%s807_s0] sm:$0xff]   ;;  %vm52_vm1 = vcmask 130048   ;;  %v673_v17 = vmov 0   ;;  %vm259_vm2 = vcmask 261120  }
  0x15   :  { %559 = vmatprep.mubr.msk.bf16.mxu0 %vm672_vm0, %v671_v0  ;;  %565 = vmatprep.mubr.msk.bf16.mxu1 %vm672_vm0, %v671_v0  ;;  %v100_v6 = vpack.c.bf16 %v99_v5, %v98_v3  ;;  %v143_v8 = vld [vmem:[#allocation2 + $0x20] sm:$0xff]  ;;  %v144_v9 = vld [vmem:[#allocation2 + $0x28] sm:$0xff]  ;;  %v188_v11 = vld [vmem:[#allocation2 + $0x30] sm:$0xff]  ;;  %vm365_vm3 = vcmask 523264   ;;  %vm429_vm4 = vcmask 1041409   ;;  %vm431_vm5 = vcmask 1042434  }
  0x16   :  { %558 = vmatpush3.bf16.msra.mxu0 %v46_v4  ;;  %v145_v10 = vpack.c.bf16 %v144_v9, %v143_v8  ;;  %v189_v12 = vld [vmem:[#allocation2 + $0x38] sm:$0xff]  ;;  %v614_v14 = vld [vmem:[%s810_s3] sm:$0xff]   ;;  %v615_v15 = vld [vmem:[%s810_s3 + $0x8] sm:$0xff]   ;;  %612 = vset.pattern.permute.xlu0 %v673_v17  ;;  %vm433_vm6 = vcmask 1043459   ;;  %s674_s8 = smov [#allocation5]   ;;  %vm503_vm7 = vcmask 60416  }
  0x17   :  { %564 = vmatpush3.bf16.msra.mxu1 %v100_v6  ;;  %569 = vmatprep.subr.bf16.mxu0 %v671_v0  ;;  %v190_v13 = vpack.c.bf16 %v189_v12, %v188_v11  ;;  %v345_v16 = vld [vmem:[%s808_s1] sm:$0xff]  ;;  %v346_v18 = vld [vmem:[%s808_s1 + $0x8] sm:$0xff]  ;;  %v618_v41 = vld [vmem:[%s812_s5 + $0x10] sm:$0xff]   ;;  %s511_s9 = sshll.u32 %s674_s8, 4  ;;  %s512_s9 = int_to_ptr.vmem [resolvable:$true] %s511_s9 }
  0x18   :  { %575 = vmatprep.subr.bf16.mxu1 %v671_v0  ;;  %349 = vperm.xlu0 %612, %v345_v16   ;;  %v616_v39 = vld [vmem:[%s812_s5] sm:$0xff]   ;;  %v617_v40 = vld [vmem:[%s812_s5 + $0x8] sm:$0xff]   ;;  %v619_v42 = vld [vmem:[%s812_s5 + $0x18] sm:$0xff]   ;;  %s642_s10 = scalar_lea.vmem %s512_s9, 64  ;;  %p647_p9 = scmp.lt.s32.totalorder %s512_s9, %s512_s9 }
  0x19   :  { %560 = vmatmul.mubr.msk.bf16.vlgmr.msra.gmra.mrb[0].mxu0 %vm52_vm1, %v613_v7  ;;  %v525_v43 = vld [vmem:[%s811_s4] ss:$0 sm:$0xff]  ;;  %p643_p8 = scmp.ne.s32.totalorder %s512_s9, %s642_s10  ;;  %p648_p10 = scmp.lt.s32.totalorder %s642_s10, %s642_s10 }
  0x1a   :  { %566 = vmatmul.mubr.msk.bf16.vlgmr.msra.gmra.mrb[0].mxu1 %vm52_vm1, %v613_v7  ;;  %570 = vmatpush3.bf16.msra.mxu0 %v145_v10 }
  0x1b   :  { %576 = vmatpush3.bf16.msra.mxu1 %v190_v13  ;;  %571 = vmatprep.mubr.msk.bf16.mxu0 %vm672_vm0, %v671_v0  ;;  %p649_p11 = por %p648_p10, %p647_p9 }
  0x1c   :  { %577 = vmatprep.mubr.msk.bf16.mxu1 %vm672_vm0, %v671_v0  ;;  %581 = vmatprep.subr.bf16.mxu0 %v614_v14 }
  0x1d   :  { %593 = vmatprep.subr.bf16.mxu1 %v671_v0  ;;  %354 = vperm.xlu0 %612, %v346_v18   ;;  %p650_p12 = pnand %p649_p11, %p643_p8 }
  0x21   :  { %572 = vmatmul.mubr.msk.bf16.vlgmr.msra.gmra.mrb[4].mxu0 %vm52_vm1, %v613_v7 }
  0x22   :  { %578 = vmatmul.mubr.msk.bf16.vlgmr.msra.gmra.mrb[4].mxu1 %vm52_vm1, %v613_v7  ;;  %582 = vmatpush3.bf16.msra.mxu0 %v614_v14 }
  0x23   :  { %601 = vmatprep.mubr.msk.bf16.mxu1 %vm672_vm0, %v671_v0  ;;  %583 = vmatprep.subr.bf16.mxu0 %v615_v15 }
  0x24   :  { %594 = vmatpush3.bf16.msra.mxu1 %v616_v39 }
  0x25   :  { %595 = vmatprep.subr.bf16.mxu1 %v671_v0 }
  0x26   :  { %584 = vmatpush3.bf16.msra.mxu0 %v615_v15 }
  0x28   :  { %596 = vmatpush3.bf16.msra.mxu1 %v617_v40 }
  0x29   :  { %597 = vmatprep.subr.bf16.mxu1 %v671_v0 }
  0x2c   :  { %598 = vmatpush3.bf16.msra.mxu1 %v618_v41 }
  0x2d   :  { %599 = vmatprep.subr.bf16.mxu1 %v671_v0 }
  0x30   :  { %600 = vmatpush3.bf16.msra.mxu1 %v619_v42 }
  0x97   :  { %v350_v44 = vpop.permute.xlu0 %349 }
  0x9c   :  { %v355_v55 = vpop.permute.xlu0 %354 }
  0xec   :  { %v90_v19 = vpop.f32.mrb[0].mxu0 }
  0xed   :  { %v135_v20 = vpop.f32.mrb[0].mxu1  ;;  %v561_v21 = vpop.f32.mrb[1].mxu0 }
  0xee   :  { %v567_v22 = vpop.f32.mrb[1].mxu1  ;;  %v93_v23 = vpop.f32.mrb[2].mxu0 }
  0xef   :  { %v232_v24 = vpack.c.bf16 %v93_v23, %v90_v19  ;;  %v138_v25 = vpop.f32.mrb[2].mxu1  ;;  %v562_v26 = vpop.f32.mrb[3].mxu0 }
  0xf0   :  { %v233_v27 = vpack.c.bf16 %v138_v25, %v135_v20  ;;  %v568_v28 = vpop.f32.mrb[3].mxu1 }
  0xf1   :  { %585 = vmatprep.mubr.msk.bf16.mxu0 %vm259_vm2, %v232_v24 }
  0xf2   :  { %586 = vmatmul.mubr.msk.bf16.vlgmr.msra.gmra.mrb[8].mxu0 %vm259_vm2, %v233_v27 }
  0xf4   :  { %v180_v29 = vpop.f32.mrb[4].mxu0 }
  0xf5   :  { %v225_v30 = vpop.f32.mrb[4].mxu1  ;;  %v573_v31 = vpop.f32.mrb[5].mxu0 }
  0xf6   :  { %v579_v32 = vpop.f32.mrb[5].mxu1  ;;  %v183_v33 = vpop.f32.mrb[6].mxu0 }
  0xf7   :  { %v234_v34 = vpack.c.bf16 %v183_v33, %v180_v29  ;;  %v228_v35 = vpop.f32.mrb[6].mxu1  ;;  %v574_v36 = vpop.f32.mrb[7].mxu0 }
  0xf8   :  { %v235_v37 = vpack.c.bf16 %v228_v35, %v225_v30  ;;  %v580_v38 = vpop.f32.mrb[7].mxu1 }
  0xf9   :  { %589 = vmatprep.mubr.msk.bf16.mxu0 %vm259_vm2, %v234_v34 }
  0xfa   :  { %590 = vmatmul.mubr.msk.bf16.gmra.mrb[12].mxu0 %vm259_vm2, %v235_v37 }
 0x1c5   :  { %v587_v45 = vpop.f32.mrb[8].mxu0 }
 0x1c6   :  { %v315_v46 = vadd.f32 %v587_v45, %v525_v43  ;;  %v306_v47 = vpop.f32.mrb[9].mxu0 }
 0x1c7   :  { %v307_v48 = vadd.f32 %v525_v43, %v306_v47  ;;  %v588_v49 = vpop.f32.mrb[10].mxu0 }
 0x1c8   :  { %v339_v50 = vmax.f32 %v315_v46, 0.0  ;;  %v318_v51 = vadd.f32 %v588_v49, %v525_v43  ;;  %v309_v52 = vpop.f32.mrb[11].mxu0 }
 0x1c9   :  { %v337_v53 = vmax.f32 %v307_v48, 0.0  ;;  %v310_v54 = vadd.f32 %v525_v43, %v309_v52 }
 0x1ca   :  { %v359_v56 = vmul.f32 %v350_v44, %v339_v50  ;;  %v340_v57 = vmax.f32 %v318_v51, 0.0 }
 0x1cb   :  { %v357_v58 = vmul.f32 %v350_v44, %v337_v53  ;;  %v338_v59 = vmax.f32 %v310_v54, 0.0 }
 0x1cc   :  { %v360_v60 = vmul.f32 %v355_v55, %v340_v57  ;;  %v375_v63 = vsel %vm365_vm3, %v359_v56, 0.0 }
 0x1cd   :  { %v358_v61 = vmul.f32 %v355_v55, %v338_v59  ;;  %v591_v62 = vpop.f32.mrb[12].mxu0  ;;  %v366_v3 = vsel %vm365_vm3, %v357_v58, 0.0 }
 0x1ce   :  { %v376_v0 = vsel %vm365_vm3, %v360_v60, 0.0  ;;  %v331_v1 = vadd.f32 %v591_v62, %v525_v43  ;;  %v322_v2 = vpop.f32.mrb[13].mxu0  ;;  %v532_v62 = vld [vmem:[%s813_s6] ss:$0 sm:$0xff] }
 0x1cf   :  { %v367_v4 = vsel %vm365_vm3, %v358_v61, 0.0  ;;  %v377_v5 = vadd.f32 %v376_v0, %v375_v63  ;;  %v323_v6 = vadd.f32 %v525_v43, %v322_v2  ;;  %v592_v7 = vpop.f32.mrb[14].mxu0 }
 0x1d0   :  { %v368_v8 = vadd.f32 %v367_v4, %v366_v3  ;;  %v343_v9 = vmax.f32 %v331_v1, 0.0  ;;  %v334_v10 = vadd.f32 %v592_v7, %v525_v43  ;;  %v325_v11 = vpop.f32.mrb[15].mxu0 }
 0x1d1   :  { %v378_v12 = vrot.slane %v377_v5, 4  ;;  %v341_v13 = vmax.f32 %v323_v6, 0.0  ;;  %v326_v14 = vadd.f32 %v525_v43, %v325_v11 }
 0x1d2   :  { %v369_v15 = vrot.slane %v368_v8, 4  ;;  %v363_v16 = vmul.f32 %v350_v44, %v343_v9  ;;  %v344_v17 = vmax.f32 %v334_v10, 0.0 }
 0x1d3   :  { %v379_v18 = vadd.f32 %v378_v12, %v377_v5  ;;  %v361_v19 = vmul.f32 %v350_v44, %v341_v13  ;;  %v342_v20 = vmax.f32 %v326_v14, 0.0 }
 0x1d4   :  { %v370_v21 = vadd.f32 %v369_v15, %v368_v8  ;;  %v364_v22 = vmul.f32 %v355_v55, %v344_v17  ;;  %v393_v26 = vsel %vm365_vm3, %v363_v16, 0.0 }
 0x1d5   :  { %v380_v23 = vrot.slane %v379_v18, 2  ;;  %v362_v24 = vmul.f32 %v355_v55, %v342_v20  ;;  %v384_v29 = vsel %vm365_vm3, %v361_v19, 0.0 }
 0x1d6   :  { %v371_v25 = vrot.slane %v370_v21, 2  ;;  %v394_v27 = vsel %vm365_vm3, %v364_v22, 0.0 }
 0x1d7   :  { %v381_v28 = vadd.f32 %v380_v23, %v379_v18  ;;  %v395_v30 = vadd.f32 %v394_v27, %v393_v26  ;;  %v385_v31 = vsel %vm365_vm3, %v362_v24, 0.0 }
 0x1d8   :  { %v372_v32 = vadd.f32 %v371_v25, %v370_v21  ;;  %v386_v33 = vadd.f32 %v385_v31, %v384_v29 }
 0x1d9   :  { %v382_v34 = vrot.slane %v381_v28, 1  ;;  %v396_v35 = vrot.slane %v395_v30, 4 }
 0x1da   :  { %v373_v36 = vrot.slane %v372_v32, 1  ;;  %v387_v37 = vrot.slane %v386_v33, 4 }
 0x1db   :  { %v383_v38 = vadd.f32 %v382_v34, %v381_v28  ;;  %v397_v39 = vadd.f32 %v396_v35, %v395_v30 }
 0x1dc   :  { %v374_v40 = vadd.f32 %v373_v36, %v372_v32  ;;  %v388_v41 = vadd.f32 %v387_v37, %v386_v33 }
 0x1dd   :  { %v403_v42 = vpack.c.bf16 %v383_v38, %v383_v38  ;;  %v398_v43 = vrot.slane %v397_v39, 2 }
 0x1de   :  { %v402_v44 = vpack.c.bf16 %v374_v40, %v374_v40  ;;  %v389_v45 = vrot.slane %v388_v41, 2 }
 0x1df   :  { %v426_v46 = vunpack.c.l.b16 %v403_v42  ;;  %v399_v47 = vadd.f32 %v398_v43, %v397_v39 }
 0x1e0   :  { %v425_v48 = vunpack.c.l.b16 %v402_v44  ;;  %v390_v49 = vadd.f32 %v389_v45, %v388_v41 }
 0x1e1   :  { %v400_v50 = vrot.slane %v399_v47, 1 }
 0x1e2   :  { %v391_v51 = vrot.slane %v390_v49, 1  ;;  %v430_v52 = vsel %vm429_vm4, %v426_v46, %v425_v48 }
 0x1e3   :  { %v401_v53 = vadd.f32 %v400_v50, %v399_v47 }
 0x1e4   :  { %v392_v54 = vadd.f32 %v391_v51, %v390_v49 }
 0x1e5   :  { %v405_v55 = vpack.c.bf16 %v401_v53, %v401_v53 }
 0x1e6   :  { %v404_v56 = vpack.c.bf16 %v392_v54, %v392_v54 }
 0x1e7   :  { %v428_v58 = vunpack.c.l.b16 %v405_v55 }
 0x1e8   :  { %v427_v57 = vunpack.c.l.b16 %v404_v56 }
 0x1ea   :  { %v432_v59 = vsel %vm431_vm5, %v427_v57, %v430_v52 }
 0x1eb   :  { %v434_v60 = vsel %vm433_vm6, %v428_v58, %v432_v59 }
 0x1ec   :  { %v435_v61 = vpack.c.b16 %v434_v60, %v434_v60 }
 0x1ee   :  { %602 = vmatmul.mubr.msk.bf16.vlgmr.msra.gmra.mrb[8].mxu1 %vm365_vm3, %v435_v61 }
 0x2c1   :  { %v497_v63 = vpop.f32.mrb[8].mxu1 }
 0x2c2   :  { %v498_v0 = vadd.f32 %v532_v62, %v497_v63  ;;  %v603_v1 = vpop.f32.mrb[9].mxu1 }
 0x2c3   :  { %v500_v2 = vpop.f32.mrb[10].mxu1 }
 0x2c4   :  { %v604_v3 = vpop.f32.mrb[11].mxu1  ;;  %504 = vst.msk [vmem:[#allocation5] sm:$0xf] %vm503_vm7, %v498_v0 }
 0x2c5   :  { %653 = shalt.err (!%p650_p12)
}
 0x2c6   :  { %s654_s6 = scalar_lea.hbm %s814_s7, 64 }
 0x2c7   :  { %p655_p13 = scmp.ne.s32.totalorder %s814_s7, %s654_s6  ;;  %p658_p0 = scmp.lt.u32.totalorder %s654_s6, %s814_s7 }
 0x2c9   :  { %p660_p1 = pnand %p658_p0, %p655_p13 }
 0x2cb   :  { %663 = shalt.err (!%p660_p1)
}
 0x2cc   :  { %514 = dma.vmem_to_hbm [thread:$0]  %s512_s9, 64, %s814_s7, [#allocation4]  }
 0x2cd   :  { %666 = dma.done.wait [#allocation4], 64  }
 0x2ce   :  { %667 = vsyncadd [#allocation4], 4294967232 }
 0x2cf   :  { %518 = vsyncpa [#allocation3], 1 }
 0x2d0   :  { %519 = vsyncpa [#allocation4], 1 }

</bundles_post_ra>
